<compile_context>
chip_gen: v7x
topology: tpu7x:2x2x1
jax: 0.10.0
libtpu: 0.0.40
codegen_flags: <defaults>
</compile_context>

<pallas_src>
import jax
import jax.numpy as jnp
from jax import lax
from jax.experimental import pallas as pl
from jax.experimental.pallas import tpu as pltpu

H = 5          # hidden width of every hidden layer
SUB_ROWS = 8   # rows per in-register sub-chunk (8 x 256 f32 = 2 vregs / value)

# Flat-packed parameter layout (76 f32 scalars, lives in SMEM inside the kernel)
_OFF_W1 = 0                 # (5,)   layer-1 weight (in_features = 1)
_OFF_B1 = _OFF_W1 + H       # (5,)
_OFF_W2 = _OFF_B1 + H       # (25,)  row-major [in, out]
_OFF_B2 = _OFF_W2 + H * H   # (5,)
_OFF_W3 = _OFF_B2 + H       # (25,)  row-major [in, out]
_OFF_B3 = _OFF_W3 + H * H   # (5,)
_OFF_W4 = _OFF_B3 + H       # (5,)
_OFF_B4 = _OFF_W4 + H       # (1,)
N_PARAMS = _OFF_B4 + 1      # 76


def mlp_kernel(p_ref, x_ref, o_ref):
    """Full 4-layer MLP on one lane-dense (block_rows, C) tile of the batch.

    p_ref: (76,) f32 in SMEM -- all weights/biases, read once as scalars.
    x_ref/o_ref: (block_rows, C) f32 VMEM tiles (block_rows % 8 == 0,
    C % 128 == 0).  The tile is processed in (SUB_ROWS, C) sub-chunks so the
    whole layer chain stays in vregs (no VMEM temporaries, no vld/vst-slot
    saturation).
    """
    # Hoist all 76 scalar reads out of the sub-chunk loop (pure VPU splats).
    w1 = [p_ref[_OFF_W1 + j] for j in range(H)]
    b1 = [p_ref[_OFF_B1 + j] for j in range(H)]
    w2 = [[p_ref[_OFF_W2 + i * H + j] for j in range(H)] for i in range(H)]
    b2 = [p_ref[_OFF_B2 + j] for j in range(H)]
    w3 = [[p_ref[_OFF_W3 + i * H + j] for j in range(H)] for i in range(H)]
    b3 = [p_ref[_OFF_B3 + j] for j in range(H)]
    w4 = [p_ref[_OFF_W4 + i] for i in range(H)]
    b4 = p_ref[_OFF_B4]

    n_sub = x_ref.shape[0] // SUB_ROWS

    def sub_chunk(s, carry):
        r = pl.multiple_of(s * SUB_ROWS, SUB_ROWS)
        x = x_ref[pl.ds(r, SUB_ROWS), :]                        # (SUB_ROWS, C)

        # layer 1 (1 -> 5) + ReLU:  h1[j] = relu(x * w1[j] + b1[j])
        h1 = [jnp.maximum(x * w1[j] + b1[j], 0.0) for j in range(H)]

        # layer 2 (5 -> 5) + ReLU
        h2 = []
        for j in range(H):
            acc = h1[0] * w2[0][j] + b2[j]
            for i in range(1, H):
                acc = acc + h1[i] * w2[i][j]
            h2.append(jnp.maximum(acc, 0.0))

        # layer 3 (5 -> 5) + ReLU
        h3 = []
        for j in range(H):
            acc = h2[0] * w3[0][j] + b3[j]
            for i in range(1, H):
                acc = acc + h2[i] * w3[i][j]
            h3.append(jnp.maximum(acc, 0.0))

        # layer 4 (5 -> 1), no activation
        out = h3[0] * w4[0] + b4
        for i in range(1, H):
            out = out + h3[i] * w4[i]

        o_ref[pl.ds(r, SUB_ROWS), :] = out.astype(o_ref.dtype)
        return carry

    # Keep register pressure bounded (~24-48 live vregs) while amortizing loop
    # overhead across two sub-chunks.
    unroll = 2 if (n_sub >= 2 and n_sub % 2 == 0) else 1
    lax.fori_loop(0, n_sub, sub_chunk, 0, unroll=unroll)


def pack_params(p):
    """Flatten all weights/biases into one (76,) f32 vector (SMEM payload)."""
    return jnp.concatenate([
        p["w1"].reshape(-1), p["b1"].reshape(-1),
        p["w2"].reshape(-1), p["b2"].reshape(-1),
        p["w3"].reshape(-1), p["b3"].reshape(-1),
        p["w4"].reshape(-1), p["b4"].reshape(-1),
    ]).astype(jnp.float32)


def _round_up(a, b):
    return ((a + b - 1) // b) * b


def _num_tensorcores():
    """v7x has 2 TensorCores per chip; v5e/v6e have 1.  Best-effort query."""
    try:
        kind = jax.devices()[0].device_kind.lower()
    except Exception:
        return 1
    return 2 if "v7" in kind else 1


def sine_model_forward(x, params):
    """x: (N, 1) or (N,) float32.  Returns (N, 1) float32."""
    xf = jnp.asarray(x, jnp.float32).reshape(-1)
    N = int(xf.shape[0])

    # Lane-dense slab: C multiple of 128 (unmasked vector stores).  Keep the
    # sub-chunk at <= 256 lanes so the ~12 live f32 intermediates stay well
    # under the 64-vreg file; use 128 lanes for tiny batches to cut padding.
    C = 128 if N <= SUB_ROWS * 128 else 256
    rows_needed = _round_up(pl.cdiv(N, C), SUB_ROWS)

    # Grid sizing (generation-aware):
    #   * ~8 pipeline steps per TensorCore for large batches so the BlockSpec
    #     double-buffer reaches steady state (2 TCs on v7x, 1 on v5e/v6e);
    #   * a single step for small batches (no forced padding / step overhead);
    #   * blocks capped at 512 rows: 512 x 256 f32 = 512 KiB per I/O buffer,
    #     ~2 MiB double-buffered in+out -- far below v7x's 64 MiB physical /
    #     32 MiB scoped VMEM (intermediates never hit VMEM thanks to the
    #     in-register sub-chunking above).
    num_tc = _num_tensorcores()
    min_block_rows = _round_up(max(1, 32768 // C), SUB_ROWS)  # amortize ~0.35us/step
    max_block_rows = 512
    block_rows = _round_up(pl.cdiv(rows_needed, 8 * num_tc), SUB_ROWS)
    block_rows = max(block_rows, min_block_rows)
    block_rows = min(block_rows, max_block_rows, rows_needed)
    rows = _round_up(rows_needed, block_rows)

    x2d = jnp.pad(xf, (0, rows * C - N)).reshape(rows, C)
    p_flat = pack_params(params)

    out2d = pl.pallas_call(
        mlp_kernel,
        out_shape=jax.ShapeDtypeStruct((rows, C), jnp.float32),
        grid_spec=pltpu.PrefetchScalarGridSpec(
            num_scalar_prefetch=0,
            grid=(rows // block_rows,),
            in_specs=[
                pl.BlockSpec(memory_space=pltpu.MemorySpace.SMEM),  # packed params
                pl.BlockSpec((block_rows, C), lambda i: (i, 0)),    # x row tile
            ],
            out_specs=pl.BlockSpec((block_rows, C), lambda i: (i, 0)),
        ),
        compiler_params=pltpu.CompilerParams(
            dimension_semantics=("parallel",),
            vmem_limit_bytes=32 * 1024 * 1024,
        ),
    )(p_flat, x2d)

    return out2d.reshape(-1)[:N].reshape(N, 1)


def init_params(key):
    """Deterministic init matching nn.Linear shapes; weights stored (in, out)."""
    ks = jax.random.split(key, 8)

    def lin(kw, kb, fan_in, fan_out):
        bound = 1.0 / jnp.sqrt(fan_in)
        w = jax.random.uniform(kw, (fan_in, fan_out), jnp.float32, -bound, bound)
        b = jax.random.uniform(kb, (fan_out,), jnp.float32, -bound, bound)
        return w, b

    w1, b1 = lin(ks[0], ks[1], 1, 5)
    w2, b2 = lin(ks[2], ks[3], 5, 5)
    w3, b3 = lin(ks[4], ks[5], 5, 5)
    w4, b4 = lin(ks[6], ks[7], 5, 1)
    return dict(w1=w1, b1=b1, w2=w2, b2=b2, w3=w3, b3=b3, w4=w4, b4=b4)


def reference_forward(x, p):
    hp = jax.lax.Precision.HIGHEST
    h = jnp.maximum(jnp.dot(x, p["w1"], precision=hp) + p["b1"], 0.0)
    h = jnp.maximum(jnp.dot(h, p["w2"], precision=hp) + p["b2"], 0.0)
    h = jnp.maximum(jnp.dot(h, p["w3"], precision=hp) + p["b3"], 0.0)
    return jnp.dot(h, p["w4"], precision=hp) + p["b4"]


if __name__ == "__main__":
    key = jax.random.PRNGKey(0)
    k_x, k_p = jax.random.split(key)

    N = 1200  # same batch size as the original script (M = 1200)
    x = jax.random.uniform(k_x, (N, 1), jnp.float32) * 2.0 * jnp.pi
    params = init_params(k_p)

    out = jax.block_until_ready(sine_model_forward(x, params))
    ref = reference_forward(x, params)

    assert out.shape == (N, 1)
    assert jnp.allclose(out, ref, atol=1e-5, rtol=1e-5), (
        f"mismatch vs JAX reference, max abs diff {jnp.max(jnp.abs(out - ref))}")

    print("KERNEL_OK")
</pallas_src>

<mosaic_0001>
module attributes {stable_mosaic.version = 11 : i64} {
  func.func @mlp_kernel(%arg0: i32, %arg1: memref<76xf32, #tpu.memory_space<smem>>, %arg2: memref<8x256xf32, #tpu.memory_space<vmem>>, %arg3: memref<8x256xf32, #tpu.memory_space<vmem>>) attributes {dimension_semantics = [#tpu.dimension_semantics<parallel>], iteration_bounds = array<i64: 1>, scalar_prefetch = 0 : i64, scratch_operands = 0 : i64, tpu.core_type = #tpu.core_type<tc>, window_params = [{transform_indices = @transform_0, window_bounds = array<i64: 76>}, {transform_indices = @transform_1, window_bounds = array<i64: 8, 256>}, {transform_indices = @transform_2, window_bounds = array<i64: 8, 256>}]} {
    %c0 = arith.constant 0 : index
    %0 = memref.load %arg1[%c0] : memref<76xf32, #tpu.memory_space<smem>>
    %c1 = arith.constant 1 : index
    %1 = memref.load %arg1[%c1] : memref<76xf32, #tpu.memory_space<smem>>
    %c2 = arith.constant 2 : index
    %2 = memref.load %arg1[%c2] : memref<76xf32, #tpu.memory_space<smem>>
    %c3 = arith.constant 3 : index
    %3 = memref.load %arg1[%c3] : memref<76xf32, #tpu.memory_space<smem>>
    %c4 = arith.constant 4 : index
    %4 = memref.load %arg1[%c4] : memref<76xf32, #tpu.memory_space<smem>>
    %c5 = arith.constant 5 : index
    %5 = memref.load %arg1[%c5] : memref<76xf32, #tpu.memory_space<smem>>
    %c6 = arith.constant 6 : index
    %6 = memref.load %arg1[%c6] : memref<76xf32, #tpu.memory_space<smem>>
    %c7 = arith.constant 7 : index
    %7 = memref.load %arg1[%c7] : memref<76xf32, #tpu.memory_space<smem>>
    %c8 = arith.constant 8 : index
    %8 = memref.load %arg1[%c8] : memref<76xf32, #tpu.memory_space<smem>>
    %c9 = arith.constant 9 : index
    %9 = memref.load %arg1[%c9] : memref<76xf32, #tpu.memory_space<smem>>
    %c10 = arith.constant 10 : index
    %10 = memref.load %arg1[%c10] : memref<76xf32, #tpu.memory_space<smem>>
    %c11 = arith.constant 11 : index
    %11 = memref.load %arg1[%c11] : memref<76xf32, #tpu.memory_space<smem>>
    %c12 = arith.constant 12 : index
    %12 = memref.load %arg1[%c12] : memref<76xf32, #tpu.memory_space<smem>>
    %c13 = arith.constant 13 : index
    %13 = memref.load %arg1[%c13] : memref<76xf32, #tpu.memory_space<smem>>
    %c14 = arith.constant 14 : index
    %14 = memref.load %arg1[%c14] : memref<76xf32, #tpu.memory_space<smem>>
    %c15 = arith.constant 15 : index
    %15 = memref.load %arg1[%c15] : memref<76xf32, #tpu.memory_space<smem>>
    %c16 = arith.constant 16 : index
    %16 = memref.load %arg1[%c16] : memref<76xf32, #tpu.memory_space<smem>>
    %c17 = arith.constant 17 : index
    %17 = memref.load %arg1[%c17] : memref<76xf32, #tpu.memory_space<smem>>
    %c18 = arith.constant 18 : index
    %18 = memref.load %arg1[%c18] : memref<76xf32, #tpu.memory_space<smem>>
    %c19 = arith.constant 19 : index
    %19 = memref.load %arg1[%c19] : memref<76xf32, #tpu.memory_space<smem>>
    %c20 = arith.constant 20 : index
    %20 = memref.load %arg1[%c20] : memref<76xf32, #tpu.memory_space<smem>>
    %c21 = arith.constant 21 : index
    %21 = memref.load %arg1[%c21] : memref<76xf32, #tpu.memory_space<smem>>
    %c22 = arith.constant 22 : index
    %22 = memref.load %arg1[%c22] : memref<76xf32, #tpu.memory_space<smem>>
    %c23 = arith.constant 23 : index
    %23 = memref.load %arg1[%c23] : memref<76xf32, #tpu.memory_space<smem>>
    %c24 = arith.constant 24 : index
    %24 = memref.load %arg1[%c24] : memref<76xf32, #tpu.memory_space<smem>>
    %c25 = arith.constant 25 : index
    %25 = memref.load %arg1[%c25] : memref<76xf32, #tpu.memory_space<smem>>
    %c26 = arith.constant 26 : index
    %26 = memref.load %arg1[%c26] : memref<76xf32, #tpu.memory_space<smem>>
    %c27 = arith.constant 27 : index
    %27 = memref.load %arg1[%c27] : memref<76xf32, #tpu.memory_space<smem>>
    %c28 = arith.constant 28 : index
    %28 = memref.load %arg1[%c28] : memref<76xf32, #tpu.memory_space<smem>>
    %c29 = arith.constant 29 : index
    %29 = memref.load %arg1[%c29] : memref<76xf32, #tpu.memory_space<smem>>
    %c30 = arith.constant 30 : index
    %30 = memref.load %arg1[%c30] : memref<76xf32, #tpu.memory_space<smem>>
    %c31 = arith.constant 31 : index
    %31 = memref.load %arg1[%c31] : memref<76xf32, #tpu.memory_space<smem>>
    %c32 = arith.constant 32 : index
    %32 = memref.load %arg1[%c32] : memref<76xf32, #tpu.memory_space<smem>>
    %c33 = arith.constant 33 : index
    %33 = memref.load %arg1[%c33] : memref<76xf32, #tpu.memory_space<smem>>
    %c34 = arith.constant 34 : index
    %34 = memref.load %arg1[%c34] : memref<76xf32, #tpu.memory_space<smem>>
    %c35 = arith.constant 35 : index
    %35 = memref.load %arg1[%c35] : memref<76xf32, #tpu.memory_space<smem>>
    %c36 = arith.constant 36 : index
    %36 = memref.load %arg1[%c36] : memref<76xf32, #tpu.memory_space<smem>>
    %c37 = arith.constant 37 : index
    %37 = memref.load %arg1[%c37] : memref<76xf32, #tpu.memory_space<smem>>
    %c38 = arith.constant 38 : index
    %38 = memref.load %arg1[%c38] : memref<76xf32, #tpu.memory_space<smem>>
    %c39 = arith.constant 39 : index
    %39 = memref.load %arg1[%c39] : memref<76xf32, #tpu.memory_space<smem>>
    %c40 = arith.constant 40 : index
    %40 = memref.load %arg1[%c40] : memref<76xf32, #tpu.memory_space<smem>>
    %c41 = arith.constant 41 : index
    %41 = memref.load %arg1[%c41] : memref<76xf32, #tpu.memory_space<smem>>
    %c42 = arith.constant 42 : index
    %42 = memref.load %arg1[%c42] : memref<76xf32, #tpu.memory_space<smem>>
    %c43 = arith.constant 43 : index
    %43 = memref.load %arg1[%c43] : memref<76xf32, #tpu.memory_space<smem>>
    %c44 = arith.constant 44 : index
    %44 = memref.load %arg1[%c44] : memref<76xf32, #tpu.memory_space<smem>>
    %c45 = arith.constant 45 : index
    %45 = memref.load %arg1[%c45] : memref<76xf32, #tpu.memory_space<smem>>
    %c46 = arith.constant 46 : index
    %46 = memref.load %arg1[%c46] : memref<76xf32, #tpu.memory_space<smem>>
    %c47 = arith.constant 47 : index
    %47 = memref.load %arg1[%c47] : memref<76xf32, #tpu.memory_space<smem>>
    %c48 = arith.constant 48 : index
    %48 = memref.load %arg1[%c48] : memref<76xf32, #tpu.memory_space<smem>>
    %c49 = arith.constant 49 : index
    %49 = memref.load %arg1[%c49] : memref<76xf32, #tpu.memory_space<smem>>
    %c50 = arith.constant 50 : index
    %50 = memref.load %arg1[%c50] : memref<76xf32, #tpu.memory_space<smem>>
    %c51 = arith.constant 51 : index
    %51 = memref.load %arg1[%c51] : memref<76xf32, #tpu.memory_space<smem>>
    %c52 = arith.constant 52 : index
    %52 = memref.load %arg1[%c52] : memref<76xf32, #tpu.memory_space<smem>>
    %c53 = arith.constant 53 : index
    %53 = memref.load %arg1[%c53] : memref<76xf32, #tpu.memory_space<smem>>
    %c54 = arith.constant 54 : index
    %54 = memref.load %arg1[%c54] : memref<76xf32, #tpu.memory_space<smem>>
    %c55 = arith.constant 55 : index
    %55 = memref.load %arg1[%c55] : memref<76xf32, #tpu.memory_space<smem>>
    %c56 = arith.constant 56 : index
    %56 = memref.load %arg1[%c56] : memref<76xf32, #tpu.memory_space<smem>>
    %c57 = arith.constant 57 : index
    %57 = memref.load %arg1[%c57] : memref<76xf32, #tpu.memory_space<smem>>
    %c58 = arith.constant 58 : index
    %58 = memref.load %arg1[%c58] : memref<76xf32, #tpu.memory_space<smem>>
    %c59 = arith.constant 59 : index
    %59 = memref.load %arg1[%c59] : memref<76xf32, #tpu.memory_space<smem>>
    %c60 = arith.constant 60 : index
    %60 = memref.load %arg1[%c60] : memref<76xf32, #tpu.memory_space<smem>>
    %c61 = arith.constant 61 : index
    %61 = memref.load %arg1[%c61] : memref<76xf32, #tpu.memory_space<smem>>
    %c62 = arith.constant 62 : index
    %62 = memref.load %arg1[%c62] : memref<76xf32, #tpu.memory_space<smem>>
    %c63 = arith.constant 63 : index
    %63 = memref.load %arg1[%c63] : memref<76xf32, #tpu.memory_space<smem>>
    %c64 = arith.constant 64 : index
    %64 = memref.load %arg1[%c64] : memref<76xf32, #tpu.memory_space<smem>>
    %c65 = arith.constant 65 : index
    %65 = memref.load %arg1[%c65] : memref<76xf32, #tpu.memory_space<smem>>
    %c66 = arith.constant 66 : index
    %66 = memref.load %arg1[%c66] : memref<76xf32, #tpu.memory_space<smem>>
    %c67 = arith.constant 67 : index
    %67 = memref.load %arg1[%c67] : memref<76xf32, #tpu.memory_space<smem>>
    %c68 = arith.constant 68 : index
    %68 = memref.load %arg1[%c68] : memref<76xf32, #tpu.memory_space<smem>>
    %c69 = arith.constant 69 : index
    %69 = memref.load %arg1[%c69] : memref<76xf32, #tpu.memory_space<smem>>
    %c70 = arith.constant 70 : index
    %70 = memref.load %arg1[%c70] : memref<76xf32, #tpu.memory_space<smem>>
    %c71 = arith.constant 71 : index
    %71 = memref.load %arg1[%c71] : memref<76xf32, #tpu.memory_space<smem>>
    %c72 = arith.constant 72 : index
    %72 = memref.load %arg1[%c72] : memref<76xf32, #tpu.memory_space<smem>>
    %c73 = arith.constant 73 : index
    %73 = memref.load %arg1[%c73] : memref<76xf32, #tpu.memory_space<smem>>
    %c74 = arith.constant 74 : index
    %74 = memref.load %arg1[%c74] : memref<76xf32, #tpu.memory_space<smem>>
    %c75 = arith.constant 75 : index
    %75 = memref.load %arg1[%c75] : memref<76xf32, #tpu.memory_space<smem>>
    %c0_i32 = arith.constant 0 : i32
    %c8_i32 = arith.constant 8 : i32
    %76 = arith.muli %c0_i32, %c8_i32 : i32
    %77 = tpu.assume_multiple %76, 8 : i32
    %78 = arith.index_cast %77 : i32 to index
    %c0_0 = arith.constant 0 : index
    %79 = vector.load %arg2[%78, %c0_0] : memref<8x256xf32, #tpu.memory_space<vmem>>, vector<8x256xf32>
    %80 = vector.broadcast %0 : f32 to vector<8x256xf32>
    %81 = arith.mulf %79, %80 : vector<8x256xf32>
    %82 = vector.broadcast %5 : f32 to vector<8x256xf32>
    %83 = arith.addf %81, %82 : vector<8x256xf32>
    %cst = arith.constant 0.000000e+00 : f32
    %84 = vector.broadcast %cst : f32 to vector<8x256xf32>
    %85 = arith.maximumf %83, %84 : vector<8x256xf32>
    %86 = vector.broadcast %1 : f32 to vector<8x256xf32>
    %87 = arith.mulf %79, %86 : vector<8x256xf32>
    %88 = vector.broadcast %6 : f32 to vector<8x256xf32>
    %89 = arith.addf %87, %88 : vector<8x256xf32>
    %cst_1 = arith.constant 0.000000e+00 : f32
    %90 = vector.broadcast %cst_1 : f32 to vector<8x256xf32>
    %91 = arith.maximumf %89, %90 : vector<8x256xf32>
    %92 = vector.broadcast %2 : f32 to vector<8x256xf32>
    %93 = arith.mulf %79, %92 : vector<8x256xf32>
    %94 = vector.broadcast %7 : f32 to vector<8x256xf32>
    %95 = arith.addf %93, %94 : vector<8x256xf32>
    %cst_2 = arith.constant 0.000000e+00 : f32
    %96 = vector.broadcast %cst_2 : f32 to vector<8x256xf32>
    %97 = arith.maximumf %95, %96 : vector<8x256xf32>
    %98 = vector.broadcast %3 : f32 to vector<8x256xf32>
    %99 = arith.mulf %79, %98 : vector<8x256xf32>
    %100 = vector.broadcast %8 : f32 to vector<8x256xf32>
    %101 = arith.addf %99, %100 : vector<8x256xf32>
    %cst_3 = arith.constant 0.000000e+00 : f32
    %102 = vector.broadcast %cst_3 : f32 to vector<8x256xf32>
    %103 = arith.maximumf %101, %102 : vector<8x256xf32>
    %104 = vector.broadcast %4 : f32 to vector<8x256xf32>
    %105 = arith.mulf %79, %104 : vector<8x256xf32>
    %106 = vector.broadcast %9 : f32 to vector<8x256xf32>
    %107 = arith.addf %105, %106 : vector<8x256xf32>
    %cst_4 = arith.constant 0.000000e+00 : f32
    %108 = vector.broadcast %cst_4 : f32 to vector<8x256xf32>
    %109 = arith.maximumf %107, %108 : vector<8x256xf32>
    %110 = vector.broadcast %10 : f32 to vector<8x256xf32>
    %111 = arith.mulf %85, %110 : vector<8x256xf32>
    %112 = vector.broadcast %35 : f32 to vector<8x256xf32>
    %113 = arith.addf %111, %112 : vector<8x256xf32>
    %114 = vector.broadcast %15 : f32 to vector<8x256xf32>
    %115 = arith.mulf %91, %114 : vector<8x256xf32>
    %116 = arith.addf %113, %115 : vector<8x256xf32>
    %117 = vector.broadcast %20 : f32 to vector<8x256xf32>
    %118 = arith.mulf %97, %117 : vector<8x256xf32>
    %119 = arith.addf %116, %118 : vector<8x256xf32>
    %120 = vector.broadcast %25 : f32 to vector<8x256xf32>
    %121 = arith.mulf %103, %120 : vector<8x256xf32>
    %122 = arith.addf %119, %121 : vector<8x256xf32>
    %123 = vector.broadcast %30 : f32 to vector<8x256xf32>
    %124 = arith.mulf %109, %123 : vector<8x256xf32>
    %125 = arith.addf %122, %124 : vector<8x256xf32>
    %cst_5 = arith.constant 0.000000e+00 : f32
    %126 = vector.broadcast %cst_5 : f32 to vector<8x256xf32>
    %127 = arith.maximumf %125, %126 : vector<8x256xf32>
    %128 = vector.broadcast %11 : f32 to vector<8x256xf32>
    %129 = arith.mulf %85, %128 : vector<8x256xf32>
    %130 = vector.broadcast %36 : f32 to vector<8x256xf32>
    %131 = arith.addf %129, %130 : vector<8x256xf32>
    %132 = vector.broadcast %16 : f32 to vector<8x256xf32>
    %133 = arith.mulf %91, %132 : vector<8x256xf32>
    %134 = arith.addf %131, %133 : vector<8x256xf32>
    %135 = vector.broadcast %21 : f32 to vector<8x256xf32>
    %136 = arith.mulf %97, %135 : vector<8x256xf32>
    %137 = arith.addf %134, %136 : vector<8x256xf32>
    %138 = vector.broadcast %26 : f32 to vector<8x256xf32>
    %139 = arith.mulf %103, %138 : vector<8x256xf32>
    %140 = arith.addf %137, %139 : vector<8x256xf32>
    %141 = vector.broadcast %31 : f32 to vector<8x256xf32>
    %142 = arith.mulf %109, %141 : vector<8x256xf32>
    %143 = arith.addf %140, %142 : vector<8x256xf32>
    %cst_6 = arith.constant 0.000000e+00 : f32
    %144 = vector.broadcast %cst_6 : f32 to vector<8x256xf32>
    %145 = arith.maximumf %143, %144 : vector<8x256xf32>
    %146 = vector.broadcast %12 : f32 to vector<8x256xf32>
    %147 = arith.mulf %85, %146 : vector<8x256xf32>
    %148 = vector.broadcast %37 : f32 to vector<8x256xf32>
    %149 = arith.addf %147, %148 : vector<8x256xf32>
    %150 = vector.broadcast %17 : f32 to vector<8x256xf32>
    %151 = arith.mulf %91, %150 : vector<8x256xf32>
    %152 = arith.addf %149, %151 : vector<8x256xf32>
    %153 = vector.broadcast %22 : f32 to vector<8x256xf32>
    %154 = arith.mulf %97, %153 : vector<8x256xf32>
    %155 = arith.addf %152, %154 : vector<8x256xf32>
    %156 = vector.broadcast %27 : f32 to vector<8x256xf32>
    %157 = arith.mulf %103, %156 : vector<8x256xf32>
    %158 = arith.addf %155, %157 : vector<8x256xf32>
    %159 = vector.broadcast %32 : f32 to vector<8x256xf32>
    %160 = arith.mulf %109, %159 : vector<8x256xf32>
    %161 = arith.addf %158, %160 : vector<8x256xf32>
    %cst_7 = arith.constant 0.000000e+00 : f32
    %162 = vector.broadcast %cst_7 : f32 to vector<8x256xf32>
    %163 = arith.maximumf %161, %162 : vector<8x256xf32>
    %164 = vector.broadcast %13 : f32 to vector<8x256xf32>
    %165 = arith.mulf %85, %164 : vector<8x256xf32>
    %166 = vector.broadcast %38 : f32 to vector<8x256xf32>
    %167 = arith.addf %165, %166 : vector<8x256xf32>
    %168 = vector.broadcast %18 : f32 to vector<8x256xf32>
    %169 = arith.mulf %91, %168 : vector<8x256xf32>
    %170 = arith.addf %167, %169 : vector<8x256xf32>
    %171 = vector.broadcast %23 : f32 to vector<8x256xf32>
    %172 = arith.mulf %97, %171 : vector<8x256xf32>
    %173 = arith.addf %170, %172 : vector<8x256xf32>
    %174 = vector.broadcast %28 : f32 to vector<8x256xf32>
    %175 = arith.mulf %103, %174 : vector<8x256xf32>
    %176 = arith.addf %173, %175 : vector<8x256xf32>
    %177 = vector.broadcast %33 : f32 to vector<8x256xf32>
    %178 = arith.mulf %109, %177 : vector<8x256xf32>
    %179 = arith.addf %176, %178 : vector<8x256xf32>
    %cst_8 = arith.constant 0.000000e+00 : f32
    %180 = vector.broadcast %cst_8 : f32 to vector<8x256xf32>
    %181 = arith.maximumf %179, %180 : vector<8x256xf32>
    %182 = vector.broadcast %14 : f32 to vector<8x256xf32>
    %183 = arith.mulf %85, %182 : vector<8x256xf32>
    %184 = vector.broadcast %39 : f32 to vector<8x256xf32>
    %185 = arith.addf %183, %184 : vector<8x256xf32>
    %186 = vector.broadcast %19 : f32 to vector<8x256xf32>
    %187 = arith.mulf %91, %186 : vector<8x256xf32>
    %188 = arith.addf %185, %187 : vector<8x256xf32>
    %189 = vector.broadcast %24 : f32 to vector<8x256xf32>
    %190 = arith.mulf %97, %189 : vector<8x256xf32>
    %191 = arith.addf %188, %190 : vector<8x256xf32>
    %192 = vector.broadcast %29 : f32 to vector<8x256xf32>
    %193 = arith.mulf %103, %192 : vector<8x256xf32>
    %194 = arith.addf %191, %193 : vector<8x256xf32>
    %195 = vector.broadcast %34 : f32 to vector<8x256xf32>
    %196 = arith.mulf %109, %195 : vector<8x256xf32>
    %197 = arith.addf %194, %196 : vector<8x256xf32>
    %cst_9 = arith.constant 0.000000e+00 : f32
    %198 = vector.broadcast %cst_9 : f32 to vector<8x256xf32>
    %199 = arith.maximumf %197, %198 : vector<8x256xf32>
    %200 = vector.broadcast %40 : f32 to vector<8x256xf32>
    %201 = arith.mulf %127, %200 : vector<8x256xf32>
    %202 = vector.broadcast %65 : f32 to vector<8x256xf32>
    %203 = arith.addf %201, %202 : vector<8x256xf32>
    %204 = vector.broadcast %45 : f32 to vector<8x256xf32>
    %205 = arith.mulf %145, %204 : vector<8x256xf32>
    %206 = arith.addf %203, %205 : vector<8x256xf32>
    %207 = vector.broadcast %50 : f32 to vector<8x256xf32>
    %208 = arith.mulf %163, %207 : vector<8x256xf32>
    %209 = arith.addf %206, %208 : vector<8x256xf32>
    %210 = vector.broadcast %55 : f32 to vector<8x256xf32>
    %211 = arith.mulf %181, %210 : vector<8x256xf32>
    %212 = arith.addf %209, %211 : vector<8x256xf32>
    %213 = vector.broadcast %60 : f32 to vector<8x256xf32>
    %214 = arith.mulf %199, %213 : vector<8x256xf32>
    %215 = arith.addf %212, %214 : vector<8x256xf32>
    %cst_10 = arith.constant 0.000000e+00 : f32
    %216 = vector.broadcast %cst_10 : f32 to vector<8x256xf32>
    %217 = arith.maximumf %215, %216 : vector<8x256xf32>
    %218 = vector.broadcast %41 : f32 to vector<8x256xf32>
    %219 = arith.mulf %127, %218 : vector<8x256xf32>
    %220 = vector.broadcast %66 : f32 to vector<8x256xf32>
    %221 = arith.addf %219, %220 : vector<8x256xf32>
    %222 = vector.broadcast %46 : f32 to vector<8x256xf32>
    %223 = arith.mulf %145, %222 : vector<8x256xf32>
    %224 = arith.addf %221, %223 : vector<8x256xf32>
    %225 = vector.broadcast %51 : f32 to vector<8x256xf32>
    %226 = arith.mulf %163, %225 : vector<8x256xf32>
    %227 = arith.addf %224, %226 : vector<8x256xf32>
    %228 = vector.broadcast %56 : f32 to vector<8x256xf32>
    %229 = arith.mulf %181, %228 : vector<8x256xf32>
    %230 = arith.addf %227, %229 : vector<8x256xf32>
    %231 = vector.broadcast %61 : f32 to vector<8x256xf32>
    %232 = arith.mulf %199, %231 : vector<8x256xf32>
    %233 = arith.addf %230, %232 : vector<8x256xf32>
    %cst_11 = arith.constant 0.000000e+00 : f32
    %234 = vector.broadcast %cst_11 : f32 to vector<8x256xf32>
    %235 = arith.maximumf %233, %234 : vector<8x256xf32>
    %236 = vector.broadcast %42 : f32 to vector<8x256xf32>
    %237 = arith.mulf %127, %236 : vector<8x256xf32>
    %238 = vector.broadcast %67 : f32 to vector<8x256xf32>
    %239 = arith.addf %237, %238 : vector<8x256xf32>
    %240 = vector.broadcast %47 : f32 to vector<8x256xf32>
    %241 = arith.mulf %145, %240 : vector<8x256xf32>
    %242 = arith.addf %239, %241 : vector<8x256xf32>
    %243 = vector.broadcast %52 : f32 to vector<8x256xf32>
    %244 = arith.mulf %163, %243 : vector<8x256xf32>
    %245 = arith.addf %242, %244 : vector<8x256xf32>
    %246 = vector.broadcast %57 : f32 to vector<8x256xf32>
    %247 = arith.mulf %181, %246 : vector<8x256xf32>
    %248 = arith.addf %245, %247 : vector<8x256xf32>
    %249 = vector.broadcast %62 : f32 to vector<8x256xf32>
    %250 = arith.mulf %199, %249 : vector<8x256xf32>
    %251 = arith.addf %248, %250 : vector<8x256xf32>
    %cst_12 = arith.constant 0.000000e+00 : f32
    %252 = vector.broadcast %cst_12 : f32 to vector<8x256xf32>
    %253 = arith.maximumf %251, %252 : vector<8x256xf32>
    %254 = vector.broadcast %43 : f32 to vector<8x256xf32>
    %255 = arith.mulf %127, %254 : vector<8x256xf32>
    %256 = vector.broadcast %68 : f32 to vector<8x256xf32>
    %257 = arith.addf %255, %256 : vector<8x256xf32>
    %258 = vector.broadcast %48 : f32 to vector<8x256xf32>
    %259 = arith.mulf %145, %258 : vector<8x256xf32>
    %260 = arith.addf %257, %259 : vector<8x256xf32>
    %261 = vector.broadcast %53 : f32 to vector<8x256xf32>
    %262 = arith.mulf %163, %261 : vector<8x256xf32>
    %263 = arith.addf %260, %262 : vector<8x256xf32>
    %264 = vector.broadcast %58 : f32 to vector<8x256xf32>
    %265 = arith.mulf %181, %264 : vector<8x256xf32>
    %266 = arith.addf %263, %265 : vector<8x256xf32>
    %267 = vector.broadcast %63 : f32 to vector<8x256xf32>
    %268 = arith.mulf %199, %267 : vector<8x256xf32>
    %269 = arith.addf %266, %268 : vector<8x256xf32>
    %cst_13 = arith.constant 0.000000e+00 : f32
    %270 = vector.broadcast %cst_13 : f32 to vector<8x256xf32>
    %271 = arith.maximumf %269, %270 : vector<8x256xf32>
    %272 = vector.broadcast %44 : f32 to vector<8x256xf32>
    %273 = arith.mulf %127, %272 : vector<8x256xf32>
    %274 = vector.broadcast %69 : f32 to vector<8x256xf32>
    %275 = arith.addf %273, %274 : vector<8x256xf32>
    %276 = vector.broadcast %49 : f32 to vector<8x256xf32>
    %277 = arith.mulf %145, %276 : vector<8x256xf32>
    %278 = arith.addf %275, %277 : vector<8x256xf32>
    %279 = vector.broadcast %54 : f32 to vector<8x256xf32>
    %280 = arith.mulf %163, %279 : vector<8x256xf32>
    %281 = arith.addf %278, %280 : vector<8x256xf32>
    %282 = vector.broadcast %59 : f32 to vector<8x256xf32>
    %283 = arith.mulf %181, %282 : vector<8x256xf32>
    %284 = arith.addf %281, %283 : vector<8x256xf32>
    %285 = vector.broadcast %64 : f32 to vector<8x256xf32>
    %286 = arith.mulf %199, %285 : vector<8x256xf32>
    %287 = arith.addf %284, %286 : vector<8x256xf32>
    %cst_14 = arith.constant 0.000000e+00 : f32
    %288 = vector.broadcast %cst_14 : f32 to vector<8x256xf32>
    %289 = arith.maximumf %287, %288 : vector<8x256xf32>
    %290 = vector.broadcast %70 : f32 to vector<8x256xf32>
    %291 = arith.mulf %217, %290 : vector<8x256xf32>
    %292 = vector.broadcast %75 : f32 to vector<8x256xf32>
    %293 = arith.addf %291, %292 : vector<8x256xf32>
    %294 = vector.broadcast %71 : f32 to vector<8x256xf32>
    %295 = arith.mulf %235, %294 : vector<8x256xf32>
    %296 = arith.addf %293, %295 : vector<8x256xf32>
    %297 = vector.broadcast %72 : f32 to vector<8x256xf32>
    %298 = arith.mulf %253, %297 : vector<8x256xf32>
    %299 = arith.addf %296, %298 : vector<8x256xf32>
    %300 = vector.broadcast %73 : f32 to vector<8x256xf32>
    %301 = arith.mulf %271, %300 : vector<8x256xf32>
    %302 = arith.addf %299, %301 : vector<8x256xf32>
    %303 = vector.broadcast %74 : f32 to vector<8x256xf32>
    %304 = arith.mulf %289, %303 : vector<8x256xf32>
    %305 = arith.addf %302, %304 : vector<8x256xf32>
    %306 = arith.index_cast %77 : i32 to index
    %c0_15 = arith.constant 0 : index
    %307 = vector.load %arg3[%306, %c0_15] : memref<8x256xf32, #tpu.memory_space<vmem>>, vector<8x256xf32>
    tpu.vector_store %arg3[%306, %c0_15], %305 {strides = array<i32>} : memref<8x256xf32, #tpu.memory_space<vmem>>, vector<8x256xf32>,
    %c1_i32 = arith.constant 1 : i32
    return
  }
  func.func @transform_0(%arg0: i32) -> i32 {
    %c0_i32 = arith.constant 0 : i32
    %c0_i32_0 = arith.constant 0 : i32
    return %c0_i32 : i32
  }
  func.func @transform_1(%arg0: i32) -> (i32, i32) {
    %c0_i32 = arith.constant 0 : i32
    %c0_i32_0 = arith.constant 0 : i32
    return %arg0, %c0_i32 : i32, i32
  }
  func.func @transform_2(%arg0: i32) -> (i32, i32) {
    %c0_i32 = arith.constant 0 : i32
    %c0_i32_0 = arith.constant 0 : i32
    return %arg0, %c0_i32 : i32, i32
  }
}

</mosaic_0001>

<bundles_post_ra>
// kernel: tpu_custom_call.1
= control target key start
LH: loop header
LB: loop body
LE: loop exit
PB: predicated region body
PF: predicated region fallthrough
CT: control target
= control target key end

     0   :  { %7 = vsyncpa [#allocation5], 0  ;;  %s1048_s0 = inlined_call_operand.hbm [shape: f32[76], index: 0, kind: input, shape index: {}]   ;;  %s1049_s1 = inlined_call_operand.hbm [shape: f32[8,256], index: 1, kind: input, shape index: {}]   ;;  %s1050_s2 = inlined_call_operand.hbm [shape: f32[8,256], index: 2, kind: output, shape index: {}]  }
   0x1   :  { %8 = vsyncpa [#allocation3], 0 }
   0x2   :  { %9 = vsyncpa [#allocation4], 0  ;;  %s560_s11 = scalar_lea.hbm %s1048_s0, 16 }
   0x3   :  { %p561_p0 = scmp.ne.s32.totalorder %s1048_s0, %s560_s11  ;;  %p564_p1 = scmp.lt.u32.totalorder %s560_s11, %s1048_s0 }
   0x5   :  { %p566_p2 = pnand %p564_p1, %p561_p0 }
   0x7   :  { %569 = shalt.err (!%p566_p2)
}
   0x8   :  { %s620_s16 = smov [#allocation2]   ;;  %s621_s19 = smov [#allocation6]  }
   0x9   :  { %17 = dma.hbm_to_smem %s1048_s0, 16, %s620_s16, [#allocation5]  }
   0xa   :  { %s24_s20 = sshll.u32 %s621_s19, 4  ;;  %s570_s23 = scalar_lea.hbm %s1049_s1, 256  ;;  %s25_s20 = int_to_ptr.vmem [resolvable:$true] %s24_s20 }
   0xb   :  { %p571_p3 = scmp.ne.s32.totalorder %s1049_s1, %s570_s23  ;;  %p574_p4 = scmp.lt.u32.totalorder %s570_s23, %s1049_s1 }
   0xd   :  { %p576_p5 = pnand %p574_p4, %p571_p3 }
   0xf   :  { %579 = shalt.err (!%p576_p5)
}
  0x10   :  { %s580_s28 = scalar_lea.vmem %s25_s20, 256  ;;  %p585_p7 = scmp.lt.s32.totalorder %s25_s20, %s25_s20 }
  0x11   :  { %p581_p6 = scmp.ne.s32.totalorder %s25_s20, %s580_s28  ;;  %p586_p8 = scmp.lt.s32.totalorder %s580_s28, %s580_s28 }
  0x13   :  { %p587_p9 = por %p586_p8, %p585_p7 }
  0x15   :  { %p588_p10 = pnand %p587_p9, %p581_p6 }
  0x17   :  { %591 = shalt.err (!%p588_p10)
}
  0x18   :  { %27 = dma.hbm_to_vmem [thread:$0]  %s1049_s1, 256, %s25_s20, [#allocation3]  }
  0x19   :  { %614 = dma.done.wait [#allocation5], 16  }
  0x1a   :  { %615 = vsyncadd [#allocation5], 4294967280 }
  0x1b   :  { %616 = dma.done.wait [#allocation3], 256  }
  0x1c   :  { %617 = vsyncadd [#allocation3], 4294967040 }
  0x1d   :  { %34 = sfence }
  0x1e   :  { %s35_s30 = sld [smem:[#allocation2]]  ;;  %s482_s3 = sld [smem:[#allocation2 + $0x1]]  ;;  %v114_v0 = vld [vmem:[#allocation6] sm:$0xff]  ;;  %v115_v1 = vld [vmem:[#allocation6 + $0x8] sm:$0xff] }
  0x1f   :  { %s662_s4 = sld [smem:[#allocation2 + $0x2]]  ;;  %s664_s5 = sld [smem:[#allocation2 + $0x3]] }
  0x20   :  { %s666_s6 = sld [smem:[#allocation2 + $0x4]]  ;;  %s486_s7 = sld [smem:[#allocation2 + $0x5]] }
  0x21   :  { %s487_s8 = sld [smem:[#allocation2 + $0x6]]  ;;  %s668_s9 = sld [smem:[#allocation2 + $0x7]] }
  0x22   :  { %s670_s1 = sld [smem:[#allocation2 + $0x8]]  ;;  %s672_s10 = sld [smem:[#allocation2 + $0x9]] }
  0x23   :  { %s674_s11 = sld [smem:[#allocation2 + $0xa]]  ;;  %s676_s12 = sld [smem:[#allocation2 + $0xf]] }
  0x24   :  { %v116_v2 = vstv %s35_s30  ;;  %v124_v3 = vstv %s482_s3  ;;  %s681_s13 = sld [smem:[#allocation2 + $0xb]]  ;;  %s683_s14 = sld [smem:[#allocation2 + $0x10]] }
  0x25   :  { %v117_v4 = vmul.f32 %v116_v2, %v114_v0  ;;  %v118_v5 = vmul.f32 %v116_v2, %v115_v1  ;;  %v125_v6 = vmul.f32 %v124_v3, %v114_v0  ;;  %v126_v7 = vmul.f32 %v124_v3, %v115_v1  ;;  %s685_s15 = sld [smem:[#allocation2 + $0x14]]  ;;  %s692_s16 = sld [smem:[#allocation2 + $0x19]] }
  0x26   :  { %v119_v8 = vstv %s486_s7  ;;  %v132_v9 = vstv %s662_s4  ;;  %v140_v10 = vstv %s664_s5  ;;  %v148_v11 = vstv %s666_s6  ;;  %s698_s17 = sld [smem:[#allocation2 + $0x15]]  ;;  %s700_s18 = sld [smem:[#allocation2 + $0x1a]] }
  0x27   :  { %v120_v12 = vadd.f32 %v119_v8, %v117_v4  ;;  %v121_v13 = vadd.f32 %v119_v8, %v118_v5  ;;  %v127_v14 = vstv %s487_s8  ;;  %v133_v15 = vmul.f32 %v132_v9, %v114_v0  ;;  %s708_s19 = sld [smem:[#allocation2 + $0x1e]]  ;;  %s710_s20 = sld [smem:[#allocation2 + $0x1f]] }
  0x28   :  { %v128_v16 = vadd.f32 %v127_v14, %v125_v6  ;;  %v129_v17 = vadd.f32 %v127_v14, %v126_v7  ;;  %v134_v18 = vmul.f32 %v132_v9, %v115_v1  ;;  %v135_v19 = vstv %s668_s9  ;;  %s720_s21 = sld [smem:[#allocation2 + $0xc]]  ;;  %s722_s22 = sld [smem:[#allocation2 + $0x23]] }
  0x29   :  { %v688_v20 = vmax.f32 %v120_v12, 0.0  ;;  %v690_v21 = vmax.f32 %v121_v13, 0.0  ;;  %v136_v22 = vadd.f32 %v135_v19, %v133_v15  ;;  %v141_v23 = vmul.f32 %v140_v10, %v114_v0  ;;  %s730_s23 = sld [smem:[#allocation2 + $0x24]]  ;;  %s732_s24 = sld [smem:[#allocation2 + $0x25]] }
  0x2a   :  { %v694_v24 = vmax.f32 %v128_v16, 0.0  ;;  %v696_v25 = vmax.f32 %v129_v17, 0.0  ;;  %v137_v26 = vadd.f32 %v135_v19, %v134_v18  ;;  %v142_v27 = vmul.f32 %v140_v10, %v115_v1  ;;  %s738_s25 = sld [smem:[#allocation2 + $0x11]]  ;;  %s740_s26 = sld [smem:[#allocation2 + $0x16]] }
  0x2b   :  { %v702_v28 = vmax.f32 %v136_v22, 0.0  ;;  %v143_v29 = vstv %s670_s1  ;;  %v149_v30 = vmul.f32 %v148_v11, %v114_v0  ;;  %v150_v31 = vmul.f32 %v148_v11, %v115_v1  ;;  %s762_s27 = sld [smem:[#allocation2 + $0x1b]]  ;;  %s764_s28 = sld [smem:[#allocation2 + $0x20]] }
  0x2c   :  { %v705_v32 = vmax.f32 %v137_v26, 0.0  ;;  %v144_v33 = vadd.f32 %v143_v29, %v141_v23  ;;  %v145_v34 = vadd.f32 %v143_v29, %v142_v27  ;;  %v151_v35 = vstv %s672_s10  ;;  %s774_s0 = sld [smem:[#allocation2 + $0xd]]  ;;  %s776_s29 = sld [smem:[#allocation2 + $0x26]] }
  0x2d   :  { %v152_v36 = vadd.f32 %v151_v35, %v149_v30  ;;  %v153_v37 = vadd.f32 %v151_v35, %v150_v31  ;;  %v156_v38 = vstv %s674_s11  ;;  %v162_v39 = vstv %s676_s12  ;;  %s778_s30 = sld [smem:[#allocation2 + $0x12]]  ;;  %s780_s3 = sld [smem:[#allocation2 + $0x17]] }
  0x2e   :  { %v714_v40 = vmax.f32 %v144_v33, 0.0  ;;  %v716_v41 = vmax.f32 %v145_v34, 0.0  ;;  %v157_v42 = vmul.f32 %v156_v38, %v688_v20  ;;  %v158_v43 = vmul.f32 %v156_v38, %v690_v21  ;;  %s786_s4 = sld [smem:[#allocation2 + $0x1c]]  ;;  %s788_s5 = sld [smem:[#allocation2 + $0x21]] }
  0x2f   :  { %v724_v44 = vmax.f32 %v152_v36, 0.0  ;;  %v726_v45 = vmax.f32 %v153_v37, 0.0  ;;  %v163_v46 = vmul.f32 %v162_v39, %v694_v24  ;;  %v164_v47 = vmul.f32 %v162_v39, %v696_v25  ;;  %s792_s6 = sld [smem:[#allocation2 + $0xe]]  ;;  %s794_s7 = sld [smem:[#allocation2 + $0x27]] }
  0x30   :  { %v167_v48 = vstv %s685_s15  ;;  %v172_v49 = vstv %s692_s16  ;;  %v184_v50 = vstv %s681_s13  ;;  %v190_v51 = vstv %s683_s14  ;;  %s802_s8 = sld [smem:[#allocation2 + $0x13]]  ;;  %s804_s9 = sld [smem:[#allocation2 + $0x18]] }
  0x31   :  { %v168_v52 = vmul.f32 %v167_v48, %v702_v28  ;;  %v169_v53 = vmul.f32 %v167_v48, %v705_v32  ;;  %v173_v54 = vmul.f32 %v172_v49, %v714_v40  ;;  %v174_v55 = vmul.f32 %v172_v49, %v716_v41  ;;  %s812_s1 = sld [smem:[#allocation2 + $0x1d]]  ;;  %s814_s10 = sld [smem:[#allocation2 + $0x22]] }
  0x32   :  { %v185_v56 = vmul.f32 %v184_v50, %v688_v20  ;;  %v186_v57 = vmul.f32 %v184_v50, %v690_v21  ;;  %v191_v58 = vmul.f32 %v190_v51, %v694_v24  ;;  %v192_v59 = vmul.f32 %v190_v51, %v696_v25  ;;  %s832_s11 = sld [smem:[#allocation2 + $0x28]]  ;;  %s834_s12 = sld [smem:[#allocation2 + $0x41]] }
  0x33   :  { %v177_v60 = vstv %s708_s19  ;;  %v195_v61 = vstv %s698_s17  ;;  %v200_v62 = vstv %s700_s18  ;;  %v205_v63 = vstv %s710_s20  ;;  %s838_s13 = sld [smem:[#allocation2 + $0x2d]]  ;;  %s840_s14 = sld [smem:[#allocation2 + $0x32]] }
  0x34   :  { %v178_v0 = vmul.f32 %v177_v60, %v724_v44  ;;  %v179_v1 = vmul.f32 %v177_v60, %v726_v45  ;;  %v196_v2 = vmul.f32 %v195_v61, %v702_v28  ;;  %v197_v3 = vmul.f32 %v195_v61, %v705_v32  ;;  %s846_s15 = sld [smem:[#allocation2 + $0x37]]  ;;  %s848_s16 = sld [smem:[#allocation2 + $0x3c]] }
  0x35   :  { %v159_v4 = vstv %s722_s22  ;;  %v201_v5 = vmul.f32 %v200_v62, %v714_v40  ;;  %v202_v6 = vmul.f32 %v200_v62, %v716_v41  ;;  %v206_v7 = vmul.f32 %v205_v63, %v724_v44  ;;  %s860_s17 = sld [smem:[#allocation2 + $0x29]]  ;;  %s862_s18 = sld [smem:[#allocation2 + $0x42]] }
  0x36   :  { %v160_v8 = vadd.f32 %v159_v4, %v157_v42  ;;  %v161_v9 = vadd.f32 %v159_v4, %v158_v43  ;;  %v187_v10 = vstv %s730_s23  ;;  %v207_v11 = vmul.f32 %v205_v63, %v726_v45  ;;  %s868_s19 = sld [smem:[#allocation2 + $0x2e]]  ;;  %s870_s20 = sld [smem:[#allocation2 + $0x33]] }
  0x37   :  { %v188_v12 = vadd.f32 %v187_v10, %v185_v56  ;;  %v189_v13 = vadd.f32 %v187_v10, %v186_v57  ;;  %v212_v14 = vstv %s720_s21  ;;  %v215_v15 = vstv %s732_s24  ;;  %s884_s21 = sld [smem:[#allocation2 + $0x38]]  ;;  %s886_s22 = sld [smem:[#allocation2 + $0x3d]] }
  0x38   :  { %v165_v16 = vadd.f32 %v163_v46, %v160_v8  ;;  %v166_v17 = vadd.f32 %v164_v47, %v161_v9  ;;  %v213_v18 = vmul.f32 %v212_v14, %v688_v20  ;;  %v214_v19 = vmul.f32 %v212_v14, %v690_v21  ;;  %s894_s23 = sld [smem:[#allocation2 + $0x2a]]  ;;  %s896_s24 = sld [smem:[#allocation2 + $0x2f]] }
  0x39   :  { %v193_v22 = vadd.f32 %v191_v58, %v188_v12  ;;  %v194_v23 = vadd.f32 %v192_v59, %v189_v13  ;;  %v218_v26 = vstv %s738_s25  ;;  %v223_v27 = vstv %s740_s26  ;;  %s900_s25 = sld [smem:[#allocation2 + $0x34]]  ;;  %s902_s26 = sld [smem:[#allocation2 + $0x43]] }
  0x3a   :  { %v170_v29 = vadd.f32 %v168_v52, %v165_v16  ;;  %v171_v30 = vadd.f32 %v169_v53, %v166_v17  ;;  %v216_v31 = vadd.f32 %v215_v15, %v213_v18  ;;  %v217_v33 = vadd.f32 %v215_v15, %v214_v19 }
  0x3b   :  { %v198_v34 = vadd.f32 %v196_v2, %v193_v22  ;;  %v199_v35 = vadd.f32 %v197_v3, %v194_v23  ;;  %v219_v36 = vmul.f32 %v218_v26, %v694_v24  ;;  %v220_v37 = vmul.f32 %v218_v26, %v696_v25 }
  0x3c   :  { %v175_v38 = vadd.f32 %v173_v54, %v170_v29  ;;  %v176_v39 = vadd.f32 %v174_v55, %v171_v30  ;;  %v224_v42 = vmul.f32 %v223_v27, %v702_v28  ;;  %v225_v43 = vmul.f32 %v223_v27, %v705_v32 }
  0x3d   :  { %v203_v46 = vadd.f32 %v201_v5, %v198_v34  ;;  %v204_v47 = vadd.f32 %v202_v6, %v199_v35  ;;  %v221_v48 = vadd.f32 %v219_v36, %v216_v31  ;;  %v222_v49 = vadd.f32 %v220_v37, %v217_v33 }
  0x3e   :  { %v180_v50 = vadd.f32 %v178_v0, %v175_v38  ;;  %v181_v51 = vadd.f32 %v179_v1, %v176_v39  ;;  %v228_v52 = vstv %s762_s27  ;;  %v233_v53 = vstv %s764_s28  ;;  %s914_s27 = sld [smem:[#allocation2 + $0x2b]]  ;;  %s918_s28 = sld [smem:[#allocation2 + $0x39]] }
  0x3f   :  { %v208_v56 = vadd.f32 %v206_v7, %v203_v46  ;;  %v209_v57 = vadd.f32 %v207_v11, %v204_v47  ;;  %v226_v54 = vadd.f32 %v224_v42, %v221_v48  ;;  %v227_v55 = vadd.f32 %v225_v43, %v222_v49 }
  0x40   :  { %v796_v58 = vmax.f32 %v180_v50, 0.0  ;;  %v798_v59 = vmax.f32 %v181_v51, 0.0  ;;  %v229_v60 = vmul.f32 %v228_v52, %v714_v40  ;;  %v230_v61 = vmul.f32 %v228_v52, %v716_v41 }
  0x41   :  { %v806_v62 = vmax.f32 %v208_v56, 0.0  ;;  %v808_v63 = vmax.f32 %v209_v57, 0.0  ;;  %v234_v0 = vmul.f32 %v233_v53, %v724_v44  ;;  %v235_v1 = vmul.f32 %v233_v53, %v726_v45 }
  0x42   :  { %v231_v2 = vadd.f32 %v229_v60, %v226_v54  ;;  %v232_v3 = vadd.f32 %v230_v61, %v227_v55  ;;  %v240_v4 = vstv %s774_s0  ;;  %v243_v5 = vstv %s776_s29  ;;  %s920_s0 = sld [smem:[#allocation2 + $0x3e]]  ;;  %s926_s29 = sld [smem:[#allocation2 + $0x44]] }
  0x43   :  { %v241_v6 = vmul.f32 %v240_v4, %v688_v20  ;;  %v242_v7 = vmul.f32 %v240_v4, %v690_v21  ;;  %v246_v8 = vstv %s778_s30  ;;  %v251_v9 = vstv %s780_s3  ;;  %s935_s30 = sld [smem:[#allocation2 + $0x30]]  ;;  %s937_s3 = sld [smem:[#allocation2 + $0x35]] }
  0x44   :  { %v236_v10 = vadd.f32 %v234_v0, %v231_v2  ;;  %v237_v11 = vadd.f32 %v235_v1, %v232_v3  ;;  %v247_v12 = vmul.f32 %v246_v8, %v694_v24  ;;  %v248_v13 = vmul.f32 %v246_v8, %v696_v25 }
  0x45   :  { %v244_v14 = vadd.f32 %v243_v5, %v241_v6  ;;  %v245_v15 = vadd.f32 %v243_v5, %v242_v7  ;;  %v252_v16 = vmul.f32 %v251_v9, %v702_v28  ;;  %v253_v17 = vmul.f32 %v251_v9, %v705_v32 }
  0x46   :  { %v826_v18 = vmax.f32 %v236_v10, 0.0  ;;  %v828_v19 = vmax.f32 %v237_v11, 0.0  ;;  %v256_v22 = vstv %s786_s4  ;;  %v261_v23 = vstv %s788_s5  ;;  %s941_s4 = sld [smem:[#allocation2 + $0x3a]]  ;;  %s943_s5 = sld [smem:[#allocation2 + $0x3f]] }
  0x47   :  { %v249_v26 = vadd.f32 %v247_v12, %v244_v14  ;;  %v250_v27 = vadd.f32 %v248_v13, %v245_v15  ;;  %v257_v29 = vmul.f32 %v256_v22, %v714_v40  ;;  %v258_v30 = vmul.f32 %v256_v22, %v716_v41 }
  0x48   :  { %v262_v31 = vmul.f32 %v261_v23, %v724_v44  ;;  %v263_v33 = vmul.f32 %v261_v23, %v726_v45  ;;  %v268_v34 = vstv %s792_s6  ;;  %v271_v35 = vstv %s794_s7  ;;  %s963_s6 = sld [smem:[#allocation2 + $0x2c]]  ;;  %s965_s7 = sld [smem:[#allocation2 + $0x45]] }
  0x49   :  { %v254_v36 = vadd.f32 %v252_v16, %v249_v26  ;;  %v255_v37 = vadd.f32 %v253_v17, %v250_v27  ;;  %v269_v38 = vmul.f32 %v268_v34, %v688_v20  ;;  %v270_v39 = vmul.f32 %v268_v34, %v690_v21 }
  0x4a   :  { %v274_v42 = vstv %s802_s8  ;;  %v279_v43 = vstv %s804_s9  ;;  %v284_v46 = vstv %s812_s1  ;;  %v289_v47 = vstv %s814_s10  ;;  %s969_s8 = sld [smem:[#allocation2 + $0x31]]  ;;  %s971_s9 = sld [smem:[#allocation2 + $0x36]] }
  0x4b   :  { %v259_v48 = vadd.f32 %v257_v29, %v254_v36  ;;  %v260_v49 = vadd.f32 %v258_v30, %v255_v37  ;;  %v272_v50 = vadd.f32 %v271_v35, %v269_v38  ;;  %v273_v51 = vadd.f32 %v271_v35, %v270_v39  ;;  %s977_s1 = sld [smem:[#allocation2 + $0x3b]]  ;;  %s979_s10 = sld [smem:[#allocation2 + $0x40]] }
  0x4c   :  { %v275_v52 = vmul.f32 %v274_v42, %v694_v24  ;;  %v276_v53 = vmul.f32 %v274_v42, %v696_v25  ;;  %v280_v56 = vmul.f32 %v279_v43, %v702_v28  ;;  %v281_v57 = vmul.f32 %v279_v43, %v705_v32 }
  0x4d   :  { %v264_v20 = vadd.f32 %v262_v31, %v259_v48  ;;  %v265_v21 = vadd.f32 %v263_v33, %v260_v49  ;;  %v285_v54 = vmul.f32 %v284_v46, %v714_v40  ;;  %v286_v55 = vmul.f32 %v284_v46, %v716_v41 }
  0x4e   :  { %v277_v24 = vadd.f32 %v275_v52, %v272_v50  ;;  %v278_v25 = vadd.f32 %v276_v53, %v273_v51  ;;  %v290_v28 = vmul.f32 %v289_v47, %v724_v44  ;;  %v291_v32 = vmul.f32 %v289_v47, %v726_v45 }
  0x4f   :  { %v872_v60 = vmax.f32 %v264_v20, 0.0  ;;  %v874_v61 = vmax.f32 %v265_v21, 0.0  ;;  %v296_v40 = vstv %s832_s11  ;;  %v299_v0 = vstv %s834_s12  ;;  %s993_s11 = sld [smem:[#allocation2 + $0x46]]  ;;  %s995_s12 = sld [smem:[#allocation2 + $0x4b]] }
  0x50   :  { %v282_v41 = vadd.f32 %v280_v56, %v277_v24  ;;  %v283_v1 = vadd.f32 %v281_v57, %v278_v25  ;;  %v297_v2 = vmul.f32 %v296_v40, %v796_v58  ;;  %v298_v3 = vmul.f32 %v296_v40, %v798_v59 }
  0x51   :  { %v302_v4 = vstv %s838_s13  ;;  %v307_v44 = vstv %s840_s14  ;;  %v312_v5 = vstv %s846_s15  ;;  %v317_v45 = vstv %s848_s16  ;;  %s999_s13 = sld [smem:[#allocation2 + $0x47]]  ;;  %s1004_s14 = sld [smem:[#allocation2 + $0x48]] }
  0x52   :  { %v287_v6 = vadd.f32 %v285_v54, %v282_v41  ;;  %v288_v7 = vadd.f32 %v286_v55, %v283_v1  ;;  %v300_v8 = vadd.f32 %v299_v0, %v297_v2  ;;  %v301_v9 = vadd.f32 %v299_v0, %v298_v3  ;;  %s1006_s15 = sld [smem:[#allocation2 + $0x49]]  ;;  %s1014_s16 = sld [smem:[#allocation2 + $0x4a]] }
  0x53   :  { %v303_v10 = vmul.f32 %v302_v4, %v806_v62  ;;  %v304_v11 = vmul.f32 %v302_v4, %v808_v63  ;;  %v308_v12 = vmul.f32 %v307_v44, %v826_v18  ;;  %v309_v13 = vmul.f32 %v307_v44, %v828_v19 }
  0x54   :  { %v292_v14 = vadd.f32 %v290_v28, %v287_v6  ;;  %v293_v15 = vadd.f32 %v291_v32, %v288_v7  ;;  %v313_v16 = vmul.f32 %v312_v5, %v872_v60  ;;  %v314_v17 = vmul.f32 %v312_v5, %v874_v61 }
  0x55   :  { %v305_v22 = vadd.f32 %v303_v10, %v300_v8  ;;  %v306_v23 = vadd.f32 %v304_v11, %v301_v9  ;;  %v324_v26 = vstv %s860_s17  ;;  %v327_v27 = vstv %s862_s18  ;;  %s622_s17 = smov [#allocation7]  }
  0x56   :  { %v904_v29 = vmax.f32 %v292_v14, 0.0  ;;  %v906_v30 = vmax.f32 %v293_v15, 0.0  ;;  %v325_v31 = vmul.f32 %v324_v26, %v796_v58  ;;  %v326_v33 = vmul.f32 %v324_v26, %v798_v59  ;;  %s472_s18 = sshll.u32 %s622_s17, 4  ;;  %s473_s18 = int_to_ptr.vmem [resolvable:$true] %s472_s18 }
  0x57   :  { %v310_v34 = vadd.f32 %v308_v12, %v305_v22  ;;  %v311_v35 = vadd.f32 %v309_v13, %v306_v23  ;;  %v330_v36 = vstv %s868_s19  ;;  %v335_v37 = vstv %s870_s20  ;;  %s592_s19 = scalar_lea.vmem %s473_s18, 256  ;;  %p597_p12 = scmp.lt.s32.totalorder %s473_s18, %s473_s18 }
  0x58   :  { %v318_v38 = vmul.f32 %v317_v45, %v904_v29  ;;  %v319_v39 = vmul.f32 %v317_v45, %v906_v30  ;;  %v328_v42 = vadd.f32 %v327_v27, %v325_v31  ;;  %v329_v43 = vadd.f32 %v327_v27, %v326_v33  ;;  %p593_p11 = scmp.ne.s32.totalorder %s473_s18, %s592_s19  ;;  %p598_p13 = scmp.lt.s32.totalorder %s592_s19, %s592_s19 }
  0x59   :  { %v315_v46 = vadd.f32 %v313_v16, %v310_v34  ;;  %v316_v47 = vadd.f32 %v314_v17, %v311_v35  ;;  %v331_v48 = vmul.f32 %v330_v36, %v806_v62  ;;  %v332_v49 = vmul.f32 %v330_v36, %v808_v63 }
  0x5a   :  { %v336_v50 = vmul.f32 %v335_v37, %v826_v18  ;;  %v337_v51 = vmul.f32 %v335_v37, %v828_v19  ;;  %v340_v52 = vstv %s884_s21  ;;  %v345_v53 = vstv %s886_s22  ;;  %p599_p0 = por %p598_p13, %p597_p12 }
  0x5b   :  { %v928_v56 = vadd.f32 %v318_v38, %v315_v46  ;;  %v333_v57 = vadd.f32 %v331_v48, %v328_v42  ;;  %v334_v20 = vadd.f32 %v332_v49, %v329_v43  ;;  %v930_v21 = vadd.f32 %v319_v39, %v316_v47 }
  0x5c   :  { %v341_v54 = vmul.f32 %v340_v52, %v872_v60  ;;  %v342_v55 = vmul.f32 %v340_v52, %v874_v61  ;;  %v346_v24 = vmul.f32 %v345_v53, %v904_v29  ;;  %v347_v40 = vmul.f32 %v345_v53, %v906_v30  ;;  %p600_p1 = pnand %p599_p0, %p593_p11 }
  0x5d   :  { %v322_v25 = vmax.f32 %v928_v56, 0.0  ;;  %v338_v28 = vadd.f32 %v336_v50, %v333_v57  ;;  %v339_v32 = vadd.f32 %v337_v51, %v334_v20  ;;  %v352_v0 = vstv %s894_s23 }
  0x5e   :  { %v355_v41 = vstv %s902_s26  ;;  %v358_v1 = vstv %s896_s24  ;;  %v363_v2 = vstv %s900_s25  ;;  %v353_v44 = vmul.f32 %v352_v0, %v796_v58 }
  0x5f   :  { %v343_v3 = vadd.f32 %v341_v54, %v338_v28  ;;  %v344_v4 = vadd.f32 %v342_v55, %v339_v32  ;;  %v354_v5 = vmul.f32 %v352_v0, %v798_v59  ;;  %v323_v45 = vmax.f32 %v930_v21, 0.0 }
  0x60   :  { %v359_v6 = vmul.f32 %v358_v1, %v806_v62  ;;  %v360_v7 = vmul.f32 %v358_v1, %v808_v63  ;;  %v364_v8 = vmul.f32 %v363_v2, %v826_v18  ;;  %v356_v10 = vadd.f32 %v355_v41, %v353_v44 }
  0x61   :  { %v955_v9 = vadd.f32 %v346_v24, %v343_v3  ;;  %v357_v11 = vadd.f32 %v355_v41, %v354_v5  ;;  %v365_v12 = vmul.f32 %v363_v2, %v828_v19  ;;  %v958_v13 = vadd.f32 %v347_v40, %v344_v4 }
  0x62   :  { %v368_v14 = vstv %s918_s28  ;;  %v373_v15 = vstv %s920_s0  ;;  %v380_v16 = vstv %s914_s27  ;;  %v361_v22 = vadd.f32 %v359_v6, %v356_v10 }
  0x63   :  { %v350_v17 = vmax.f32 %v955_v9, 0.0  ;;  %v362_v23 = vadd.f32 %v360_v7, %v357_v11  ;;  %v383_v26 = vstv %s926_s29  ;;  %v369_v27 = vmul.f32 %v368_v14, %v872_v60 }
  0x64   :  { %v370_v31 = vmul.f32 %v368_v14, %v874_v61  ;;  %v374_v33 = vmul.f32 %v373_v15, %v904_v29  ;;  %v375_v34 = vmul.f32 %v373_v15, %v906_v30  ;;  %v366_v35 = vadd.f32 %v364_v8, %v361_v22 }
  0x65   :  { %v367_v36 = vadd.f32 %v365_v12, %v362_v23  ;;  %v381_v37 = vmul.f32 %v380_v16, %v796_v58  ;;  %v382_v38 = vmul.f32 %v380_v16, %v798_v59  ;;  %v386_v39 = vstv %s935_s30 }
  0x66   :  { %v391_v42 = vstv %s937_s3  ;;  %v396_v43 = vstv %s941_s4  ;;  %v401_v46 = vstv %s943_s5  ;;  %v371_v47 = vadd.f32 %v369_v27, %v366_v35 }
  0x67   :  { %v372_v48 = vadd.f32 %v370_v31, %v367_v36  ;;  %v384_v49 = vadd.f32 %v383_v26, %v381_v37  ;;  %v385_v50 = vadd.f32 %v383_v26, %v382_v38  ;;  %v387_v51 = vmul.f32 %v386_v39, %v806_v62 }
  0x68   :  { %v388_v52 = vmul.f32 %v386_v39, %v808_v63  ;;  %v392_v53 = vmul.f32 %v391_v42, %v826_v18  ;;  %v393_v57 = vmul.f32 %v391_v42, %v828_v19  ;;  %v351_v20 = vmax.f32 %v958_v13, 0.0 }
  0x69   :  { %v376_v54 = vadd.f32 %v374_v33, %v371_v47  ;;  %v377_v55 = vadd.f32 %v375_v34, %v372_v48  ;;  %v397_v24 = vmul.f32 %v396_v43, %v872_v60  ;;  %v389_v28 = vadd.f32 %v387_v51, %v384_v49 }
  0x6a   :  { %v390_v32 = vadd.f32 %v388_v52, %v385_v50  ;;  %v398_v40 = vmul.f32 %v396_v43, %v874_v61  ;;  %v402_v0 = vmul.f32 %v401_v46, %v904_v29  ;;  %v403_v1 = vmul.f32 %v401_v46, %v906_v30 }
  0x6b   :  { %v378_v41 = vmax.f32 %v376_v54, 0.0  ;;  %v408_v2 = vstv %s963_s6  ;;  %v411_v3 = vstv %s965_s7  ;;  %v394_v4 = vadd.f32 %v392_v53, %v389_v28 }
  0x6c   :  { %v395_v44 = vadd.f32 %v393_v57, %v390_v32  ;;  %v409_v5 = vmul.f32 %v408_v2, %v796_v58  ;;  %v410_v6 = vmul.f32 %v408_v2, %v798_v59  ;;  %v414_v7 = vstv %s969_s8 }
  0x6d   :  { %v419_v8 = vstv %s971_s9  ;;  %v424_v10 = vstv %s977_s1  ;;  %v429_v11 = vstv %s979_s10  ;;  %v399_v12 = vadd.f32 %v397_v24, %v394_v4 }
  0x6e   :  { %v400_v13 = vadd.f32 %v398_v40, %v395_v44  ;;  %v412_v14 = vadd.f32 %v411_v3, %v409_v5  ;;  %v413_v15 = vadd.f32 %v411_v3, %v410_v6  ;;  %v415_v16 = vmul.f32 %v414_v7, %v806_v62 }
  0x6f   :  { %v416_v22 = vmul.f32 %v414_v7, %v808_v63  ;;  %v420_v58 = vmul.f32 %v419_v8, %v826_v18  ;;  %v421_v59 = vmul.f32 %v419_v8, %v828_v19  ;;  %v379_v23 = vmax.f32 %v377_v55, 0.0 }
  0x70   :  { %v404_v26 = vadd.f32 %v402_v0, %v399_v12  ;;  %v405_v27 = vadd.f32 %v403_v1, %v400_v13  ;;  %v425_v31 = vmul.f32 %v424_v10, %v872_v60  ;;  %v417_v33 = vadd.f32 %v415_v16, %v412_v14 }
  0x71   :  { %v418_v34 = vadd.f32 %v416_v22, %v413_v15  ;;  %v426_v35 = vmul.f32 %v424_v10, %v874_v61  ;;  %v430_v62 = vmul.f32 %v429_v11, %v904_v29  ;;  %v431_v63 = vmul.f32 %v429_v11, %v906_v30 }
  0x72   :  { %v406_v36 = vmax.f32 %v404_v26, 0.0  ;;  %v436_v18 = vstv %s993_s11  ;;  %v439_v37 = vstv %s995_s12  ;;  %v422_v19 = vadd.f32 %v420_v58, %v417_v33 }
  0x73   :  { %v423_v38 = vadd.f32 %v421_v59, %v418_v34  ;;  %v437_v39 = vmul.f32 %v436_v18, %v322_v25  ;;  %v438_v60 = vmul.f32 %v436_v18, %v323_v45  ;;  %v407_v42 = vmax.f32 %v405_v27, 0.0 }
  0x74   :  { %v442_v43 = vstv %s999_s13  ;;  %v447_v46 = vstv %s1004_s14  ;;  %v452_v61 = vstv %s1006_s15  ;;  %v427_v47 = vadd.f32 %v425_v31, %v422_v19 }
  0x75   :  { %v428_v29 = vadd.f32 %v426_v35, %v423_v38  ;;  %v440_v48 = vadd.f32 %v439_v37, %v437_v39  ;;  %v441_v49 = vadd.f32 %v439_v37, %v438_v60  ;;  %v443_v30 = vmul.f32 %v442_v43, %v350_v17 }
  0x76   :  { %v444_v50 = vmul.f32 %v442_v43, %v351_v20  ;;  %v448_v51 = vmul.f32 %v447_v46, %v378_v41  ;;  %v449_v52 = vmul.f32 %v447_v46, %v379_v23  ;;  %v432_v56 = vadd.f32 %v430_v62, %v427_v47 }
  0x77   :  { %v433_v25 = vadd.f32 %v431_v63, %v428_v29  ;;  %v457_v53 = vstv %s1014_s16  ;;  %v445_v21 = vadd.f32 %v443_v30, %v440_v48  ;;  %v453_v45 = vmul.f32 %v452_v61, %v406_v36 }
  0x78   :  { %v446_v57 = vadd.f32 %v444_v50, %v441_v49  ;;  %v454_v54 = vmul.f32 %v452_v61, %v407_v42  ;;  %v434_v55 = vmax.f32 %v432_v56, 0.0 }
  0x79   :  { %v435_v24 = vmax.f32 %v433_v25, 0.0  ;;  %v450_v28 = vadd.f32 %v448_v51, %v445_v21 }
  0x7a   :  { %v451_v32 = vadd.f32 %v449_v52, %v446_v57  ;;  %v458_v40 = vmul.f32 %v457_v53, %v434_v55 }
  0x7b   :  { %v459_v0 = vmul.f32 %v457_v53, %v435_v24  ;;  %v455_v9 = vadd.f32 %v453_v45, %v450_v28 }
  0x7c   :  { %v456_v17 = vadd.f32 %v454_v54, %v451_v32 }
  0x7d   :  { %v460_v20 = vadd.f32 %v458_v40, %v455_v9 }
  0x7e   :  { %v461_v41 = vadd.f32 %v459_v0, %v456_v17 }
  0x7f   :  { %464 = vst [vmem:[#allocation7] sm:$0xff] %v460_v20 }
  0x80   :  { %465 = vst [vmem:[#allocation7 + $0x8] sm:$0xff] %v461_v41 }
  0x81   :  { %603 = shalt.err (!%p600_p1)
}
  0x82   :  { %s604_s22 = scalar_lea.hbm %s1050_s2, 256 }
  0x83   :  { %p605_p2 = scmp.ne.s32.totalorder %s1050_s2, %s604_s22  ;;  %p608_p3 = scmp.lt.u32.totalorder %s604_s22, %s1050_s2 }
  0x85   :  { %p610_p4 = pnand %p608_p3, %p605_p2 }
  0x87   :  { %613 = shalt.err (!%p610_p4)
}
  0x88   :  { %475 = dma.vmem_to_hbm [thread:$0]  %s473_s18, 256, %s1050_s2, [#allocation4]  }
  0x89   :  { %618 = dma.done.wait [#allocation4], 256  }
  0x8a   :  { %619 = vsyncadd [#allocation4], 4294967040 }
  0x8b   :  { %479 = vsyncpa [#allocation3], 1 }
  0x8c   :  { %480 = vsyncpa [#allocation4], 1 }
  0x8d   :  { %481 = vsyncpa [#allocation5], 1 }

</bundles_post_ra>
